<compile_context>
chip_gen: v6e
topology: v6e:2x2x1
jax: 0.10.0
libtpu: 0.0.40
codegen_flags: <defaults>
</compile_context>

<pallas_src>
import functools

import jax
import jax.numpy as jnp
from jax.experimental import pallas as pl
from jax.experimental.pallas import tpu as pltpu

_LANE = 128
_SUBLANE = 8
_MXU_M = 256  # full MXU M-pass on v6e/v7x


def _round_up(v, m):
    return (v + m - 1) // m * m


def _has_bf16_vpu():
    """bf16 VALUs exist on v6e/v7x; v5e and older fall back to f32 elementwise."""
    try:
        kind = jax.devices()[0].device_kind.lower()
    except Exception:
        return False
    return ("v6" in kind) or ("v7" in kind)


def _make_mlp_kernel(ew_dtype):
    """Three MXU matmuls (bf16 operands, f32 accumulation); bias/ReLU in ew_dtype."""

    def kernel(x_ref, w1_ref, b1_ref, w2_ref, b2_ref, w3_ref, b3_ref, o_ref):
        x = x_ref[...].astype(jnp.bfloat16)
        h1 = jnp.dot(x, w1_ref[...], preferred_element_type=jnp.float32)
        h1 = jnp.maximum(h1.astype(ew_dtype) + b1_ref[...].astype(ew_dtype), 0.0)
        h1 = h1.astype(jnp.bfloat16)
        h2 = jnp.dot(h1, w2_ref[...], preferred_element_type=jnp.float32)
        h2 = jnp.maximum(h2.astype(ew_dtype) + b2_ref[...].astype(ew_dtype), 0.0)
        h2 = h2.astype(jnp.bfloat16)
        y = jnp.dot(h2, w3_ref[...], preferred_element_type=jnp.float32) + b3_ref[...]
        o_ref[...] = y.astype(o_ref.dtype)

    return kernel


def prepare_mlp_params(params):
    """One-time setup: pad weights/biases lane-dense (multiples of 128 on the
    output dim) and cast MXU operands to bf16.  Call once, reuse every forward.

    params: (w1, b1, w2, b2, w3, b3) with weights stored as [in, out]
            (i.e. y = x @ W + b, equivalent to PyTorch x @ W.T + b).
    Returns: (prepared_arrays, out_dim)
    """
    w1, b1, w2, b2, w3, b3 = params
    in_dim, hidden = w1.shape
    out_dim = int(w3.shape[1])
    hid_p = _round_up(hidden, _LANE)
    out_p = _round_up(out_dim, _LANE)

    w1p = jnp.zeros((in_dim, hid_p), jnp.bfloat16).at[:, :hidden].set(
        w1.astype(jnp.bfloat16))
    w2p = jnp.zeros((hid_p, hid_p), jnp.bfloat16).at[:hidden, :hidden].set(
        w2.astype(jnp.bfloat16))
    w3p = jnp.zeros((hid_p, out_p), jnp.bfloat16).at[:hidden, :out_dim].set(
        w3.astype(jnp.bfloat16))
    b1p = jnp.zeros((1, hid_p), jnp.float32).at[:, :hidden].set(
        b1.reshape(1, -1).astype(jnp.float32))
    b2p = jnp.zeros((1, hid_p), jnp.float32).at[:, :hidden].set(
        b2.reshape(1, -1).astype(jnp.float32))
    b3p = jnp.zeros((1, out_p), jnp.float32).at[:, :out_dim].set(
        b3.reshape(1, -1).astype(jnp.float32))

    arrays = tuple(jax.device_put(a) for a in (w1p, b1p, w2p, b2p, w3p, b3p))
    return arrays, out_dim


@functools.partial(
    jax.jit, static_argnames=("out_dim", "tile_b", "slice_output", "ew_bf16"))
def _mlp_forward_impl(x, w1p, b1p, w2p, b2p, w3p, b3p, *, out_dim, tile_b,
                      slice_output, ew_bf16):
    batch, in_dim = x.shape
    hid_p = w2p.shape[0]
    out_p = w3p.shape[1]

    # Batch tile: sublane-aligned, capped by tile_b, and split into >= 2 grid
    # steps once the batch spans two full 256-row MXU passes (v7x megacore).
    batch_s = _round_up(batch, _SUBLANE)
    tb = max(_SUBLANE, min(tile_b, batch_s))
    if batch_s >= 2 * _MXU_M:
        tb = min(tb, _round_up(pl.cdiv(batch_s, 2), _MXU_M))
    batch_p = _round_up(batch, tb)

    # Only pad batch rows when needed (no K padding, no wrapper-side cast).
    if batch_p != batch:
        x_in = jnp.zeros((batch_p, in_dim), x.dtype).at[:batch, :].set(x)
    else:
        x_in = x

    grid = (batch_p // tb,)
    flops = 2 * batch_p * (in_dim * hid_p + hid_p * hid_p + hid_p * out_p)
    bytes_accessed = (
        batch_p * in_dim * x_in.dtype.itemsize
        + (w1p.size + w2p.size + w3p.size) * 2
        + (b1p.size + b2p.size + b3p.size) * 4
        + batch_p * out_p * 2)

    kernel = _make_mlp_kernel(jnp.bfloat16 if ew_bf16 else jnp.float32)

    out_padded = pl.pallas_call(
        kernel,
        out_shape=jax.ShapeDtypeStruct((batch_p, out_p), jnp.bfloat16),
        grid=grid,
        in_specs=[
            pl.BlockSpec((tb, in_dim), lambda i: (i, 0)),     # x tile (pipelined)
            pl.BlockSpec((in_dim, hid_p), lambda i: (0, 0)),  # w1 (VMEM-resident)
            pl.BlockSpec((1, hid_p), lambda i: (0, 0)),       # b1
            pl.BlockSpec((hid_p, hid_p), lambda i: (0, 0)),   # w2
            pl.BlockSpec((1, hid_p), lambda i: (0, 0)),       # b2
            pl.BlockSpec((hid_p, out_p), lambda i: (0, 0)),   # w3
            pl.BlockSpec((1, out_p), lambda i: (0, 0)),       # b3
        ],
        out_specs=pl.BlockSpec((tb, out_p), lambda i: (i, 0)),
        compiler_params=pltpu.CompilerParams(
            dimension_semantics=("parallel",)),
        cost_estimate=pl.CostEstimate(
            flops=flops, transcendentals=0, bytes_accessed=bytes_accessed),
    )(x_in, w1p, b1p, w2p, b2p, w3p, b3p)

    if not slice_output:
        return out_padded  # (batch_p, out_p) bf16; consumer slices if it cares
    return out_padded[:batch, :out_dim].astype(x.dtype)


def mlp_forward(x, prepared, tile_b=512, slice_output=True):
    """Forward pass. `prepared` is the output of prepare_mlp_params()."""
    arrays, out_dim = prepared
    return _mlp_forward_impl(
        x, *arrays, out_dim=out_dim, tile_b=int(tile_b),
        slice_output=bool(slice_output), ew_bf16=_has_bf16_vpu())


# ------------------------------- init / reference ---------------------------

def orthogonal_init(key, out_dim, in_dim, dtype=jnp.float32):
    # Mimics torch.nn.init.orthogonal_ on a (out_dim, in_dim) weight.
    rows, cols = out_dim, in_dim
    flat = jax.random.normal(key, (rows, cols), dtype=jnp.float32)
    if rows < cols:
        flat = flat.T
    q, r = jnp.linalg.qr(flat)
    d = jnp.sign(jnp.diag(r))
    q = q * d[None, :]
    if rows < cols:
        q = q.T
    return q.astype(dtype)  # shape (out_dim, in_dim)


def make_mlp_params(key, input_dim, output_dim, hidden_dim=128, dtype=jnp.float32):
    k1, k2, k3 = jax.random.split(key, 3)
    # PyTorch stores weights as (out, in); transpose to (in, out) for x @ W.
    w1 = orthogonal_init(k1, hidden_dim, input_dim, dtype).T   # (in, hidden)
    w2 = orthogonal_init(k2, hidden_dim, hidden_dim, dtype).T  # (hidden, hidden)
    w3 = orthogonal_init(k3, output_dim, hidden_dim, dtype).T  # (hidden, out)
    b1 = jnp.zeros((1, hidden_dim), dtype)
    b2 = jnp.zeros((1, hidden_dim), dtype)
    b3 = jnp.zeros((1, output_dim), dtype)
    return (w1, b1, w2, b2, w3, b3)


def mlp_reference(x, params):
    w1, b1, w2, b2, w3, b3 = params
    h1 = jnp.maximum(x @ w1 + b1, 0.0)
    h2 = jnp.maximum(h1 @ w2 + b2, 0.0)
    return h2 @ w3 + b3


if __name__ == "__main__":
    key = jax.random.PRNGKey(0)
    k_x, k_p = jax.random.split(key)

    batch, input_dim, hidden_dim, output_dim = 8, 16, 128, 4
    x = jax.random.normal(k_x, (batch, input_dim), dtype=jnp.float32)
    params = make_mlp_params(k_p, input_dim, output_dim, hidden_dim)

    # One-time prep (padding + bf16 cast hoisted out of the forward path).
    prepared = prepare_mlp_params(params)

    out = mlp_forward(x, prepared)
    out = jax.block_until_ready(out)

    ref = mlp_reference(x, params)
    assert out.shape == (batch, output_dim)
    # bf16 MXU operands / bf16 output with f32 accumulation -> relaxed tolerance.
    max_err = float(jnp.max(jnp.abs(out - ref)))
    assert jnp.allclose(out, ref, atol=5e-2, rtol=5e-2), f"max_err={max_err}"

    print("KERNEL_OK")
</pallas_src>

<mosaic_0001>
module attributes {stable_mosaic.version = 11 : i64} {
  func.func @kernel(%arg0: i32, %arg1: memref<8x16xf32, #tpu.memory_space<vmem>>, %arg2: memref<16x128xbf16, #tpu.memory_space<vmem>>, %arg3: memref<1x128xf32, #tpu.memory_space<vmem>>, %arg4: memref<128x128xbf16, #tpu.memory_space<vmem>>, %arg5: memref<1x128xf32, #tpu.memory_space<vmem>>, %arg6: memref<128x128xbf16, #tpu.memory_space<vmem>>, %arg7: memref<1x128xf32, #tpu.memory_space<vmem>>, %arg8: memref<8x128xbf16, #tpu.memory_space<vmem>>) attributes {dimension_semantics = [#tpu.dimension_semantics<parallel>], iteration_bounds = array<i64: 1>, scalar_prefetch = 0 : i64, scratch_operands = 0 : i64, tpu.core_type = #tpu.core_type<tc>, window_params = [{transform_indices = @transform_0, window_bounds = array<i64: 8, 16>}, {pipeline_mode = #tpu.pipeline_mode<synchronous>, transform_indices = @transform_1, window_bounds = array<i64: 16, 128>}, {pipeline_mode = #tpu.pipeline_mode<synchronous>, transform_indices = @transform_2, window_bounds = array<i64: 1, 128>}, {pipeline_mode = #tpu.pipeline_mode<synchronous>, transform_indices = @transform_3, window_bounds = array<i64: 128, 128>}, {pipeline_mode = #tpu.pipeline_mode<synchronous>, transform_indices = @transform_4, window_bounds = array<i64: 1, 128>}, {pipeline_mode = #tpu.pipeline_mode<synchronous>, transform_indices = @transform_5, window_bounds = array<i64: 128, 128>}, {pipeline_mode = #tpu.pipeline_mode<synchronous>, transform_indices = @transform_6, window_bounds = array<i64: 1, 128>}, {transform_indices = @transform_7, window_bounds = array<i64: 8, 128>}]} {
    %c0 = arith.constant 0 : index
    %c0_0 = arith.constant 0 : index
    %0 = vector.load %arg1[%c0, %c0_0] : memref<8x16xf32, #tpu.memory_space<vmem>>, vector<8x16xf32>
    %1 = arith.truncf %0 : vector<8x16xf32> to vector<8x16xbf16>
    %c0_1 = arith.constant 0 : index
    %c0_2 = arith.constant 0 : index
    %2 = vector.load %arg2[%c0_1, %c0_2] : memref<16x128xbf16, #tpu.memory_space<vmem>>, vector<16x128xbf16>
    %cst = arith.constant dense<0.000000e+00> : vector<8x128xf32>
    %3 = tpu.matmul %1, %2, %cst {dimension_numbers = #tpu.dot_dimension_numbers<[1], [0], [0], [1], [0, 0, 1, 1], [], []>} : vector<8x16xbf16>, vector<16x128xbf16>, vector<8x128xf32> -> vector<8x128xf32>
    %c0_3 = arith.constant 0 : index
    %c0_4 = arith.constant 0 : index
    %4 = vector.load %arg3[%c0_3, %c0_4] : memref<1x128xf32, #tpu.memory_space<vmem>>, vector<1x128xf32>
    %5 = vector.broadcast %4 : vector<1x128xf32> to vector<8x128xf32>
    %6 = arith.addf %3, %5 : vector<8x128xf32>
    %cst_5 = arith.constant 0.000000e+00 : f32
    %7 = vector.broadcast %cst_5 : f32 to vector<8x128xf32>
    %8 = arith.maximumf %6, %7 : vector<8x128xf32>
    %9 = arith.truncf %8 : vector<8x128xf32> to vector<8x128xbf16>
    %c0_6 = arith.constant 0 : index
    %c0_7 = arith.constant 0 : index
    %10 = vector.load %arg4[%c0_6, %c0_7] : memref<128x128xbf16, #tpu.memory_space<vmem>>, vector<128x128xbf16>
    %cst_8 = arith.constant dense<0.000000e+00> : vector<8x128xf32>
    %11 = tpu.matmul %9, %10, %cst_8 {dimension_numbers = #tpu.dot_dimension_numbers<[1], [0], [0], [1], [0, 0, 1, 1], [], []>} : vector<8x128xbf16>, vector<128x128xbf16>, vector<8x128xf32> -> vector<8x128xf32>
    %c0_9 = arith.constant 0 : index
    %c0_10 = arith.constant 0 : index
    %12 = vector.load %arg5[%c0_9, %c0_10] : memref<1x128xf32, #tpu.memory_space<vmem>>, vector<1x128xf32>
    %13 = vector.broadcast %12 : vector<1x128xf32> to vector<8x128xf32>
    %14 = arith.addf %11, %13 : vector<8x128xf32>
    %cst_11 = arith.constant 0.000000e+00 : f32
    %15 = vector.broadcast %cst_11 : f32 to vector<8x128xf32>
    %16 = arith.maximumf %14, %15 : vector<8x128xf32>
    %17 = arith.truncf %16 : vector<8x128xf32> to vector<8x128xbf16>
    %c0_12 = arith.constant 0 : index
    %c0_13 = arith.constant 0 : index
    %18 = vector.load %arg6[%c0_12, %c0_13] : memref<128x128xbf16, #tpu.memory_space<vmem>>, vector<128x128xbf16>
    %cst_14 = arith.constant dense<0.000000e+00> : vector<8x128xf32>
    %19 = tpu.matmul %17, %18, %cst_14 {dimension_numbers = #tpu.dot_dimension_numbers<[1], [0], [0], [1], [0, 0, 1, 1], [], []>} : vector<8x128xbf16>, vector<128x128xbf16>, vector<8x128xf32> -> vector<8x128xf32>
    %c0_15 = arith.constant 0 : index
    %c0_16 = arith.constant 0 : index
    %20 = vector.load %arg7[%c0_15, %c0_16] : memref<1x128xf32, #tpu.memory_space<vmem>>, vector<1x128xf32>
    %21 = vector.broadcast %20 : vector<1x128xf32> to vector<8x128xf32>
    %22 = arith.addf %19, %21 : vector<8x128xf32>
    %23 = arith.truncf %22 : vector<8x128xf32> to vector<8x128xbf16>
    %c0_17 = arith.constant 0 : index
    %c0_18 = arith.constant 0 : index
    %24 = vector.load %arg8[%c0_17, %c0_18] : memref<8x128xbf16, #tpu.memory_space<vmem>>, vector<8x128xbf16>
    tpu.vector_store %arg8[%c0_17, %c0_18], %23 {strides = array<i32>} : memref<8x128xbf16, #tpu.memory_space<vmem>>, vector<8x128xbf16>,
    return
  }
  func.func @transform_0(%arg0: i32) -> (i32, i32) {
    %c0_i32 = arith.constant 0 : i32
    %c0_i32_0 = arith.constant 0 : i32
    return %arg0, %c0_i32 : i32, i32
  }
  func.func @transform_1(%arg0: i32) -> (i32, i32) {
    %c0_i32 = arith.constant 0 : i32
    %c0_i32_0 = arith.constant 0 : i32
    %c0_i32_1 = arith.constant 0 : i32
    return %c0_i32, %c0_i32_0 : i32, i32
  }
  func.func @transform_2(%arg0: i32) -> (i32, i32) {
    %c0_i32 = arith.constant 0 : i32
    %c0_i32_0 = arith.constant 0 : i32
    %c0_i32_1 = arith.constant 0 : i32
    return %c0_i32, %c0_i32_0 : i32, i32
  }
  func.func @transform_3(%arg0: i32) -> (i32, i32) {
    %c0_i32 = arith.constant 0 : i32
    %c0_i32_0 = arith.constant 0 : i32
    %c0_i32_1 = arith.constant 0 : i32
    return %c0_i32, %c0_i32_0 : i32, i32
  }
  func.func @transform_4(%arg0: i32) -> (i32, i32) {
    %c0_i32 = arith.constant 0 : i32
    %c0_i32_0 = arith.constant 0 : i32
    %c0_i32_1 = arith.constant 0 : i32
    return %c0_i32, %c0_i32_0 : i32, i32
  }
  func.func @transform_5(%arg0: i32) -> (i32, i32) {
    %c0_i32 = arith.constant 0 : i32
    %c0_i32_0 = arith.constant 0 : i32
    %c0_i32_1 = arith.constant 0 : i32
    return %c0_i32, %c0_i32_0 : i32, i32
  }
  func.func @transform_6(%arg0: i32) -> (i32, i32) {
    %c0_i32 = arith.constant 0 : i32
    %c0_i32_0 = arith.constant 0 : i32
    %c0_i32_1 = arith.constant 0 : i32
    return %c0_i32, %c0_i32_0 : i32, i32
  }
  func.func @transform_7(%arg0: i32) -> (i32, i32) {
    %c0_i32 = arith.constant 0 : i32
    %c0_i32_0 = arith.constant 0 : i32
    return %arg0, %c0_i32 : i32, i32
  }
}

</mosaic_0001>

<bundles_post_ra>
// kernel: _mlp_forward_impl.1
= control target key start
LH: loop header
LB: loop body
LE: loop exit
PB: predicated region body
PF: predicated region fallthrough
CT: control target
= control target key end

     0   :  { %12 = vsyncpa [#allocation3], 0  ;;  %s675_s0 = inlined_call_operand.hbm [shape: f32[8,16], index: 0, kind: input, shape index: {}]   ;;  %s676_s1 = inlined_call_operand.hbm [shape: bf16[16,128], index: 1, kind: input, shape index: {}]   ;;  %s677_s2 = inlined_call_operand.vmem [shape: f32[1,128], index: 2, kind: input, shape index: {}]   ;;  %s678_s3 = inlined_call_operand.hbm [shape: bf16[128,128], index: 3, kind: input, shape index: {}]   ;;  %s679_s4 = inlined_call_operand.vmem [shape: f32[1,128], index: 4, kind: input, shape index: {}]   ;;  %s680_s5 = inlined_call_operand.hbm [shape: bf16[128,128], index: 5, kind: input, shape index: {}]   ;;  %s681_s6 = inlined_call_operand.vmem [shape: f32[1,128], index: 6, kind: input, shape index: {}]   ;;  %s682_s7 = inlined_call_operand.vmem [shape: bf16[8,128], index: 7, kind: output, shape index: {}]  }
   0x1   :  { %13 = vsyncpa [#allocation5], 0 }
   0x2   :  { %14 = vsyncpa [#allocation8], 0  ;;  %s574_s24 = smov [#allocation4]  }
   0x3   :  { %s30_s25 = sshll.u32 %s574_s24, 4  ;;  %s31_s25 = int_to_ptr.vmem [resolvable:$true] %s30_s25 }
   0x4   :  { %s496_s26 = scalar_lea.vmem %s31_s25, 128  ;;  %p501_p1 = scmp.lt.s32.totalorder %s31_s25, %s31_s25 }
   0x5   :  { %p497_p0 = scmp.ne.s32.totalorder %s31_s25, %s496_s26  ;;  %p502_p2 = scmp.lt.s32.totalorder %s496_s26, %s496_s26 }
   0x7   :  { %p503_p3 = por %p502_p2, %p501_p1 }
   0x9   :  { %p504_p4 = pnand %p503_p3, %p497_p0 }
   0xb   :  { %507 = shalt.err (!%p504_p4)
}
   0xc   :  { %s575_s27 = smov 64   ;;  %s576_s28 = smov 4  }
   0xd   :  { %36 = dma.hbm_to_vmem [thread:$0]  %s676_s1, 128, %s31_s25, [#allocation5], %s575_s27, %s575_s27, %s576_s28  }
   0xe   :  { %s577_s8 = smov [#allocation2]   ;;  %s578_s10 = smov [#allocation6]  }
   0xf   :  { %s21_s9 = sshll.u32 %s577_s8, 4  ;;  %s44_s11 = sshll.u32 %s578_s10, 4  ;;  %s22_s9 = int_to_ptr.vmem [resolvable:$true] %s21_s9  ;;  %s45_s11 = int_to_ptr.vmem [resolvable:$true] %s44_s11 }
  0x10   :  { %s516_s12 = scalar_lea.vmem %s22_s9, 128  ;;  %p521_p6 = scmp.lt.s32.totalorder %s22_s9, %s22_s9 }
  0x11   :  { %p517_p5 = scmp.ne.s32.totalorder %s22_s9, %s516_s12  ;;  %p522_p7 = scmp.lt.s32.totalorder %s516_s12, %s516_s12 }
  0x13   :  { %p523_p8 = por %p522_p7, %p521_p6 }
  0x15   :  { %p524_p9 = pnand %p523_p8, %p517_p5 }
  0x17   :  { %527 = shalt.err (!%p524_p9)
}
  0x18   :  { %24 = dma.hbm_to_vmem [thread:$0]  %s675_s0, 128, %s22_s9, [#allocation3]  }
  0x19   :  { %s536_s15 = scalar_lea.vmem %s45_s11, 1024  ;;  %p541_p11 = scmp.lt.s32.totalorder %s45_s11, %s45_s11 }
  0x1a   :  { %p537_p10 = scmp.ne.s32.totalorder %s45_s11, %s536_s15  ;;  %p542_p12 = scmp.lt.s32.totalorder %s536_s15, %s536_s15 }
  0x1c   :  { %p543_p13 = por %p542_p12, %p541_p11 }
  0x1e   :  { %p544_p0 = pnand %p543_p13, %p537_p10 }
  0x20   :  { %547 = shalt.err (!%p544_p0)
}
  0x21   :  { %50 = dma.hbm_to_vmem [thread:$0]  %s678_s3, 1024, %s45_s11, [#allocation5], %s575_s27, %s575_s27, %s576_s28  }
  0x22   :  { %s579_s17 = smov [#allocation7]  }
  0x23   :  { %s58_s18 = sshll.u32 %s579_s17, 4  ;;  %s59_s18 = int_to_ptr.vmem [resolvable:$true] %s58_s18 }
  0x24   :  { %s556_s19 = scalar_lea.vmem %s59_s18, 1024  ;;  %p561_p2 = scmp.lt.s32.totalorder %s59_s18, %s59_s18 }
  0x25   :  { %p557_p1 = scmp.ne.s32.totalorder %s59_s18, %s556_s19  ;;  %p562_p3 = scmp.lt.s32.totalorder %s556_s19, %s556_s19 }
  0x27   :  { %p563_p4 = por %p562_p3, %p561_p2 }
  0x29   :  { %p564_p5 = pnand %p563_p4, %p557_p1 }
  0x2b   :  { %567 = shalt.err (!%p564_p5)
}
  0x2c   :  { %64 = dma.hbm_to_vmem [thread:$0]  %s680_s5, 1024, %s59_s18, [#allocation8], %s575_s27, %s575_s27, %s576_s28  }
  0x2d   :  { %568 = dma.done.wait [#allocation3], 128  }
  0x2e   :  { %569 = vsyncadd [#allocation3], 4294967168 }
  0x2f   :  { %570 = dma.done.wait [#allocation5], 1152  }
  0x30   :  { %571 = vsyncadd [#allocation5], 4294966144 }
  0x31   :  { %572 = dma.done.wait [#allocation8], 1024  }
  0x32   :  { %573 = vsyncadd [#allocation8], 4294966272  ;;  %v580_v0 = vmov 0.0   ;;  %vm581_vm0 = vmmov 0   ;;  %v471_v1 = vld [vmem:[#allocation4] sm:$0xff]   ;;  %v80_v2 = vld [vmem:[#allocation2] sm:$0xff] }
  0x33   :  { %417 = vmatprep.subr.bf16.mxu0 %v580_v0  ;;  %419 = vmatprep.mubr.msk.bf16.mxu0 %vm581_vm0, %v580_v0  ;;  %v81_v3 = vpack.c.bf16 %v80_v2, %v80_v2  ;;  %vm97_vm1 = vcmask 130048   ;;  %v472_v4 = vld [vmem:[#allocation6 + $0x38] sm:$0xff]   ;;  %v473_v5 = vld [vmem:[#allocation6 + $0x30] sm:$0xff]   ;;  %v474_v6 = vld [vmem:[#allocation6 + $0x28] sm:$0xff]  }
  0x34   :  { %423 = vmatprep.subr.bf16.mxu1 %v580_v0  ;;  %439 = vmatprep.mubr.msk.bf16.mxu1 %vm581_vm0, %v580_v0  ;;  %v475_v7 = vld [vmem:[#allocation6 + $0x20] sm:$0xff]   ;;  %v476_v8 = vld [vmem:[#allocation6 + $0x18] sm:$0xff]   ;;  %v477_v9 = vld [vmem:[#allocation6 + $0x10] sm:$0xff]  }
  0x35   :  { %418 = vmatpush3.bf16.msra.mxu0 %v471_v1  ;;  %424 = vmatpush3.bf16.msra.mxu1 %v472_v4  ;;  %v478_v10 = vld [vmem:[#allocation6 + $0x8] sm:$0xff]   ;;  %v479_v11 = vld [vmem:[#allocation6] sm:$0xff]   ;;  %v480_v12 = vld [vmem:[#allocation7 + $0x38] sm:$0xff]  }
  0x36   :  { %443 = vmatprep.subr.bf16.mxu0 %v580_v0  ;;  %425 = vmatprep.subr.bf16.mxu1 %v580_v0  ;;  %v481_v13 = vld [vmem:[#allocation7 + $0x30] sm:$0xff]   ;;  %v482_v14 = vld [vmem:[#allocation7 + $0x28] sm:$0xff]   ;;  %v483_v15 = vld [vmem:[#allocation7 + $0x20] sm:$0xff]  }
  0x37   :  { %v484_v16 = vld [vmem:[#allocation7 + $0x18] sm:$0xff]   ;;  %v485_v17 = vld [vmem:[#allocation7 + $0x10] sm:$0xff]   ;;  %v486_v26 = vld [vmem:[#allocation7 + $0x8] sm:$0xff]  }
  0x38   :  { %420 = vmatmul.mubr.msk.bf16.vlgmr.msra.gmra.mxu0 %vm97_vm1, %v81_v3  ;;  %v376_v18 = vld [vmem:[%s677_s2] ss:$0 sm:$0xff]  ;;  %v487_v27 = vld [vmem:[#allocation7] sm:$0xff]  }
  0x39   :  { %459 = vmatprep.mubr.msk.bf16.mxu0 %vm581_vm0, %v580_v0  ;;  %426 = vmatpush3.bf16.msra.mxu1 %v473_v5  ;;  %v379_v28 = vld [vmem:[%s679_s4] ss:$0 sm:$0xff] }
  0x3a   :  { %427 = vmatprep.subr.bf16.mxu1 %v580_v0  ;;  %444 = vmatpush3.bf16.msra.mxu0 %v480_v12  ;;  %v388_v36 = vld [vmem:[%s681_s6] ss:$0 sm:$0xff] }
  0x3b   :  { %445 = vmatprep.subr.bf16.mxu0 %v580_v0 }
  0x3d   :  { %428 = vmatpush3.bf16.msra.mxu1 %v474_v6 }
  0x3e   :  { %429 = vmatprep.subr.bf16.mxu1 %v580_v0  ;;  %446 = vmatpush3.bf16.msra.mxu0 %v481_v13 }
  0x3f   :  { %447 = vmatprep.subr.bf16.mxu0 %v580_v0 }
  0x41   :  { %430 = vmatpush3.bf16.msra.mxu1 %v475_v7 }
  0x42   :  { %431 = vmatprep.subr.bf16.mxu1 %v580_v0  ;;  %448 = vmatpush3.bf16.msra.mxu0 %v482_v14 }
  0x43   :  { %449 = vmatprep.subr.bf16.mxu0 %v580_v0 }
  0x45   :  { %432 = vmatpush3.bf16.msra.mxu1 %v476_v8 }
  0x46   :  { %433 = vmatprep.subr.bf16.mxu1 %v580_v0  ;;  %450 = vmatpush3.bf16.msra.mxu0 %v483_v15 }
  0x47   :  { %451 = vmatprep.subr.bf16.mxu0 %v580_v0 }
  0x49   :  { %434 = vmatpush3.bf16.msra.mxu1 %v477_v9 }
  0x4a   :  { %435 = vmatprep.subr.bf16.mxu1 %v580_v0  ;;  %452 = vmatpush3.bf16.msra.mxu0 %v484_v16 }
  0x4b   :  { %453 = vmatprep.subr.bf16.mxu0 %v580_v0 }
  0x4d   :  { %436 = vmatpush3.bf16.msra.mxu1 %v478_v10 }
  0x4e   :  { %437 = vmatprep.subr.bf16.mxu1 %v580_v0  ;;  %454 = vmatpush3.bf16.msra.mxu0 %v485_v17 }
  0x4f   :  { %455 = vmatprep.subr.bf16.mxu0 %v580_v0 }
  0x51   :  { %438 = vmatpush3.bf16.msra.mxu1 %v479_v11 }
  0x52   :  { %456 = vmatpush3.bf16.msra.mxu0 %v486_v26 }
  0x53   :  { %457 = vmatprep.subr.bf16.mxu0 %v580_v0 }
  0x56   :  { %458 = vmatpush3.bf16.msra.mxu0 %v487_v27 }
  0xf8   :  { %v135_v19 = vpop.f32.mrf.mxu0 }
  0xf9   :  { %v136_v20 = vadd.f32 %v376_v18, %v135_v19 }
  0xfa   :  { %v421_v21 = vpop.f32.mrf.mxu0 }
  0xfb   :  { %v141_v22 = vmax.f32 %v136_v20, 0.0 }
  0xfc   :  { %v138_v23 = vpop.f32.mrf.mxu0 }
  0xfd   :  { %v142_v24 = vpack.c.bf16 %v141_v22, %v141_v22 }
  0xfe   :  { %v422_v25 = vpop.f32.mrf.mxu0 }
  0xff   :  { %440 = vmatmul.mubr.bf16.vlgmr.msra.gmra.mxu1 %v142_v24 }
 0x1bf   :  { %v248_v29 = vpop.f32.mrf.mxu1 }
 0x1c0   :  { %v249_v30 = vadd.f32 %v379_v28, %v248_v29 }
 0x1c1   :  { %v441_v31 = vpop.f32.mrf.mxu1 }
 0x1c2   :  { %v254_v32 = vmax.f32 %v249_v30, 0.0 }
 0x1c3   :  { %v251_v33 = vpop.f32.mrf.mxu1 }
 0x1c4   :  { %v255_v34 = vpack.c.bf16 %v254_v32, %v254_v32 }
 0x1c5   :  { %v442_v35 = vpop.f32.mrf.mxu1 }
 0x1c6   :  { %460 = vmatmul.mubr.bf16.vlgmr.msra.gmra.mxu0 %v255_v34 }
 0x286   :  { %v361_v37 = vpop.f32.mrf.mxu0 }
 0x287   :  { %v362_v38 = vadd.f32 %v388_v36, %v361_v37 }
 0x288   :  { %v461_v39 = vpop.f32.mrf.mxu0 }
 0x289   :  { %v367_v40 = vpack.c.bf16 %v362_v38, %v362_v38 }
 0x28a   :  { %v364_v41 = vpop.f32.mrf.mxu0 }
 0x28b   :  { %368 = vst [vmem:[%s682_s7] sm:$0xf] %v367_v40 }
 0x28c   :  { %v462_v42 = vpop.f32.mrf.mxu0 }
 0x28d   :  { %373 = vsyncpa [#allocation3], 1 }
 0x28e   :  { %374 = vsyncpa [#allocation5], 1 }
 0x28f   :  { %375 = vsyncpa [#allocation8], 1 }

</bundles_post_ra>
